<compile_context>
chip_gen: v5e
topology: v5e:2x2
jax: 0.10.0
libtpu: 0.0.40
codegen_flags: <defaults>
</compile_context>

<pallas_src>
import functools
import math

import jax
import jax.numpy as jnp
import numpy as np
from jax import lax
from jax.experimental import pallas as pl
from jax.experimental.pallas import tpu as pltpu


def glnn_kernel(adj_ref, feat_ref, graph_ref, adj_out_ref, losses_ref, *, betas):
    adj = adj_ref[...]                       # (N, N) f32
    feats = feat_ref[...]                    # (B, N, D) f32
    n = adj.shape[0]
    bsz = feats.shape[0]

    # adj_out = (A^T + A) / 2 : exact XLU transpose -> exactly symmetric.
    adj_t = jnp.transpose(adj)
    adj_out = 0.5 * (adj_t + adj)
    adj_out_ref[...] = adj_out

    # ---- GLR loss ---------------------------------------------------------
    # beta0 * sum_b ||F_b^T (I - A) F_b||_F^2 = beta0 * sum_b tr(Y_b^2),
    #   Y_b = G_b (I - A),  G_b = F_b F_b^T     ((I - A) symmetric)
    # and tr(Y^2) = <Y, Y^T>_F, so only two matmuls are needed.
    # bf16 MXU operands (f32 accumulation) for the GLR contractions only.
    feats_bf = feats.astype(jnp.bfloat16)
    adj_bf = adj_out.astype(jnp.bfloat16)
    g = jnp.einsum('bnd,bmd->bnm', feats_bf, feats_bf,
                   preferred_element_type=jnp.float32)            # (B, N, N)
    # Shared (un-batched) RHS: collapse batch into one (B*N, N) @ (N, N) matmul.
    ga = jnp.dot(g.reshape(bsz * n, n).astype(jnp.bfloat16), adj_bf,
                 preferred_element_type=jnp.float32).reshape(bsz, n, n)
    y = g - ga                                                    # Y = G (I - A)
    y_t = jnp.swapaxes(y, -1, -2)             # cheap batched minor-dim transpose
    loss_glr = betas[0] * jnp.sum(y * y_t)    # sum_b tr(Y_b^2)

    # ---- sparsity loss: beta1 * ||A||_1 ------------------------------------
    loss_sp = betas[1] * jnp.sum(jnp.abs(adj_out))

    # ---- property loss -----------------------------------------------------
    # beta2 * ||adj_out^T - adj_out||_F^2 is identically zero (adj_out is
    # exactly symmetric by construction) -> dropped, no dead work.
    rows = lax.broadcasted_iota(jnp.int32, (n, n), 0)
    cols = lax.broadcasted_iota(jnp.int32, (n, n), 1)
    eye = (rows == cols).astype(jnp.float32)
    row_sum = jnp.sum(adj_out, axis=1, keepdims=True)             # A @ ones
    prop_rows = jnp.sum((row_sum - 1.0) ** 2)
    trace = jnp.sum(adj_out * eye)
    loss_prop = betas[3] * prop_rows + betas[4] * jnp.abs(trace) ** 2

    # ---- ground-truth loss: ||A - G||_2^2 over the batch of targets --------
    diff = adj_out[None, :, :] - graph_ref[...]
    loss_gt = jnp.sum(diff * diff)

    # ---- single packed, lane-dense scalar output ---------------------------
    # lanes: 0 = glr, 1 = sparsity, 2 = prop, 3 = gt (rest zero).
    lane = lax.broadcasted_iota(jnp.int32, (1, 128), 1)
    packed = jnp.where(lane == 0, loss_glr, 0.0)
    packed = jnp.where(lane == 1, loss_sp, packed)
    packed = jnp.where(lane == 2, loss_prop, packed)
    packed = jnp.where(lane == 3, loss_gt, packed)
    losses_ref[...] = packed


def glnn_forward(features, adj, graph, betas=(0.01, 0.1, 0.0, 0.1, 0.001)):
    """Pallas GLNN forward. Returns (adj_out, loss_glr, loss_sparsity,
    loss_prop, loss_gt)."""
    features = features.astype(jnp.float32)
    adj = adj.astype(jnp.float32)
    graph = graph.astype(jnp.float32)
    N = adj.shape[-1]

    vmem = pl.BlockSpec(memory_space=pltpu.MemorySpace.VMEM)
    kernel = functools.partial(glnn_kernel,
                               betas=tuple(float(x) for x in betas))

    adj_out, losses = pl.pallas_call(
        kernel,
        out_shape=(jax.ShapeDtypeStruct((N, N), jnp.float32),    # adj_out
                   jax.ShapeDtypeStruct((1, 128), jnp.float32)),  # packed losses
        in_specs=[vmem, vmem, vmem],
        out_specs=(vmem, vmem),
    )(adj, features, graph)

    return adj_out, losses[0, 0], losses[0, 1], losses[0, 2], losses[0, 3]


def glnn_reference(features, adj, graph, betas=(0.01, 0.1, 0.0, 0.1, 0.001)):
    """Pure-JAX reference matching the PyTorch forward."""
    features = features.astype(jnp.float32)
    adj = adj.astype(jnp.float32)
    graph = graph.astype(jnp.float32)
    N = adj.shape[0]
    adj_out = 0.5 * (adj.T + adj)
    eye = jnp.eye(N, dtype=jnp.float32)
    glr = jnp.einsum('bnd,nm,bmk->bdk', features, eye - adj_out, features)
    loss_glr = betas[0] * jnp.sum(glr ** 2)
    loss_sp = betas[1] * jnp.sum(jnp.abs(adj_out))
    loss_prop = (betas[2] * jnp.sum((adj_out.T - adj_out) ** 2)
                 + betas[3] * jnp.sum((adj_out @ jnp.ones((N,), jnp.float32) - 1.0) ** 2)
                 + betas[4] * jnp.abs(jnp.trace(adj_out)) ** 2)
    loss_gt = jnp.sum((adj_out[None] - graph) ** 2)
    return adj_out, loss_glr, loss_sp, loss_prop, loss_gt


if __name__ == "__main__":
    B, N, D = 2, 16, 32   # batch, n_nodes, feature dim

    key = jax.random.PRNGKey(0)
    k_adj, k_feat, k_graph = jax.random.split(key, 3)

    # deterministic "parameter" init matching init_parameters(): U(-stdv, stdv)
    stdv = 1.0 / math.sqrt(N)
    adj = jax.random.uniform(k_adj, (N, N), jnp.float32,
                             minval=-stdv, maxval=stdv)
    features = jax.random.normal(k_feat, (B, N, D), jnp.float32)
    graph = (jax.random.uniform(k_graph, (B, N, N)) > 0.5).astype(jnp.float32)

    outs = glnn_forward(features, adj, graph)
    outs = jax.block_until_ready(outs)

    refs = glnn_reference(features, adj, graph)
    for got, want in zip(outs, refs):
        np.testing.assert_allclose(np.asarray(got), np.asarray(want),
                                   rtol=5e-2, atol=5e-2)

    print("KERNEL_OK")
</pallas_src>

<mosaic_0001>
module attributes {stable_mosaic.version = 11 : i64} {
  func.func @glnn_kernel(%arg0: memref<16x16xf32, #tpu.memory_space<vmem>>, %arg1: memref<2x16x32xf32, #tpu.memory_space<vmem>>, %arg2: memref<2x16x16xf32, #tpu.memory_space<vmem>>, %arg3: memref<16x16xf32, #tpu.memory_space<vmem>>, %arg4: memref<1x128xf32, #tpu.memory_space<vmem>>) attributes {dimension_semantics = [], scalar_prefetch = 0 : i64, scratch_operands = 0 : i64, tpu.core_type = #tpu.core_type<tc>} {
    %c0 = arith.constant 0 : index
    %c0_0 = arith.constant 0 : index
    %0 = vector.load %arg0[%c0, %c0_0] : memref<16x16xf32, #tpu.memory_space<vmem>>, vector<16x16xf32>
    %c0_1 = arith.constant 0 : index
    %c0_2 = arith.constant 0 : index
    %c0_3 = arith.constant 0 : index
    %1 = vector.load %arg1[%c0_1, %c0_2, %c0_3] : memref<2x16x32xf32, #tpu.memory_space<vmem>>, vector<2x16x32xf32>
    %2 = tpu.transpose %0, [1, 0] : vector<16x16xf32> -> vector<16x16xf32>
    %3 = arith.addf %2, %0 : vector<16x16xf32>
    %cst = arith.constant 5.000000e-01 : f32
    %4 = vector.broadcast %cst : f32 to vector<16x16xf32>
    %5 = arith.mulf %4, %3 : vector<16x16xf32>
    %c0_4 = arith.constant 0 : index
    %c0_5 = arith.constant 0 : index
    %6 = vector.load %arg3[%c0_4, %c0_5] : memref<16x16xf32, #tpu.memory_space<vmem>>, vector<16x16xf32>
    tpu.vector_store %arg3[%c0_4, %c0_5], %5 {strides = array<i32>} : memref<16x16xf32, #tpu.memory_space<vmem>>, vector<16x16xf32>,
    %7 = arith.truncf %1 : vector<2x16x32xf32> to vector<2x16x32xbf16>
    %8 = arith.truncf %5 : vector<16x16xf32> to vector<16x16xbf16>
    "tpu.trace_start"() <{level = 10 : i32, message = "bnd,bmd->bnm"}> : () -> ()
    %cst_6 = arith.constant dense<0.000000e+00> : vector<2x16x16xf32>
    %9 = tpu.matmul %7, %7, %cst_6 {dimension_numbers = #tpu.dot_dimension_numbers<[2], [2], [1], [1], [0, 0, 0, 1, 1, 1], [0], [0]>} : vector<2x16x32xbf16>, vector<2x16x32xbf16>, vector<2x16x16xf32> -> vector<2x16x16xf32>
    "tpu.trace_stop"() : () -> ()
    %10 = vector.shape_cast %9 : vector<2x16x16xf32> to vector<32x16xf32>
    %11 = arith.truncf %10 : vector<32x16xf32> to vector<32x16xbf16>
    %cst_7 = arith.constant dense<0.000000e+00> : vector<32x16xf32>
    %12 = tpu.matmul %11, %8, %cst_7 {dimension_numbers = #tpu.dot_dimension_numbers<[1], [0], [0], [1], [0, 0, 1, 1], [], []>} : vector<32x16xbf16>, vector<16x16xbf16>, vector<32x16xf32> -> vector<32x16xf32>
    %13 = vector.shape_cast %12 : vector<32x16xf32> to vector<2x16x16xf32>
    %14 = arith.subf %9, %13 : vector<2x16x16xf32>
    %15 = tpu.transpose %14, [0, 2, 1] : vector<2x16x16xf32> -> vector<2x16x16xf32>
    %16 = arith.mulf %14, %15 : vector<2x16x16xf32>
    %17 = vector.shape_cast %16 : vector<2x16x16xf32> to vector<1x2x16x16xf32>
    %cst_8 = arith.constant dense<0.000000e+00> : vector<1xf32>
    %18 = vector.multi_reduction <add>, %17, %cst_8 [1, 2, 3] : vector<1x2x16x16xf32> to vector<1xf32>
    %19 = vector.shape_cast %18 : vector<1xf32> to vector<1x1x1x1xf32>
    %20 = vector.extract %19[0, 0, 0, 0] : f32 from vector<1x1x1x1xf32>
    %cst_9 = arith.constant 0.00999999977 : f32
    %21 = arith.mulf %cst_9, %20 : f32
    %22 = math.absf %5 : vector<16x16xf32>
    %23 = vector.shape_cast %22 : vector<16x16xf32> to vector<1x16x16xf32>
    %cst_10 = arith.constant dense<0.000000e+00> : vector<1xf32>
    %24 = vector.multi_reduction <add>, %23, %cst_10 [1, 2] : vector<1x16x16xf32> to vector<1xf32>
    %25 = vector.shape_cast %24 : vector<1xf32> to vector<1x1x1xf32>
    %26 = vector.extract %25[0, 0, 0] : f32 from vector<1x1x1xf32>
    %cst_11 = arith.constant 1.000000e-01 : f32
    %27 = arith.mulf %cst_11, %26 : f32
    %28 = tpu.iota {dimensions = array<i32: 0>} : vector<16x16xi32>
    %29 = tpu.iota {dimensions = array<i32: 1>} : vector<16x16xi32>
    %30 = arith.cmpi eq, %28, %29 : vector<16x16xi32>
    %31 = arith.extui %30 : vector<16x16xi1> to vector<16x16xi32>
    %32 = arith.sitofp %31 : vector<16x16xi32> to vector<16x16xf32>
    %cst_12 = arith.constant dense<0.000000e+00> : vector<16xf32>
    %33 = vector.multi_reduction <add>, %5, %cst_12 [1] : vector<16x16xf32> to vector<16xf32>
    %34 = vector.shape_cast %33 : vector<16xf32> to vector<16x1xf32>
    %cst_13 = arith.constant 1.000000e+00 : f32
    %35 = vector.broadcast %cst_13 : f32 to vector<16x1xf32>
    %36 = arith.subf %34, %35 : vector<16x1xf32>
    %37 = arith.mulf %36, %36 : vector<16x1xf32>
    %38 = vector.shape_cast %37 : vector<16x1xf32> to vector<1x16x1xf32>
    %cst_14 = arith.constant dense<0.000000e+00> : vector<1xf32>
    %39 = vector.multi_reduction <add>, %38, %cst_14 [1, 2] : vector<1x16x1xf32> to vector<1xf32>
    %40 = vector.shape_cast %39 : vector<1xf32> to vector<1x1x1xf32>
    %41 = vector.extract %40[0, 0, 0] : f32 from vector<1x1x1xf32>
    %42 = arith.mulf %5, %32 : vector<16x16xf32>
    %43 = vector.shape_cast %42 : vector<16x16xf32> to vector<1x16x16xf32>
    %cst_15 = arith.constant dense<0.000000e+00> : vector<1xf32>
    %44 = vector.multi_reduction <add>, %43, %cst_15 [1, 2] : vector<1x16x16xf32> to vector<1xf32>
    %45 = vector.shape_cast %44 : vector<1xf32> to vector<1x1x1xf32>
    %46 = vector.extract %45[0, 0, 0] : f32 from vector<1x1x1xf32>
    %cst_16 = arith.constant 1.000000e-01 : f32
    %47 = arith.mulf %cst_16, %41 : f32
    %48 = math.absf %46 : f32
    %49 = arith.mulf %48, %48 : f32
    %cst_17 = arith.constant 1.000000e-03 : f32
    %50 = arith.mulf %cst_17, %49 : f32
    %51 = arith.addf %47, %50 : f32
    %52 = vector.shape_cast %5 : vector<16x16xf32> to vector<1x16x16xf32>
    %c0_18 = arith.constant 0 : index
    %c0_19 = arith.constant 0 : index
    %c0_20 = arith.constant 0 : index
    %53 = vector.load %arg2[%c0_18, %c0_19, %c0_20] : memref<2x16x16xf32, #tpu.memory_space<vmem>>, vector<2x16x16xf32>
    %54 = vector.broadcast %52 : vector<1x16x16xf32> to vector<2x16x16xf32>
    %55 = arith.subf %54, %53 : vector<2x16x16xf32>
    %56 = arith.mulf %55, %55 : vector<2x16x16xf32>
    %57 = vector.shape_cast %56 : vector<2x16x16xf32> to vector<1x2x16x16xf32>
    %cst_21 = arith.constant dense<0.000000e+00> : vector<1xf32>
    %58 = vector.multi_reduction <add>, %57, %cst_21 [1, 2, 3] : vector<1x2x16x16xf32> to vector<1xf32>
    %59 = vector.shape_cast %58 : vector<1xf32> to vector<1x1x1x1xf32>
    %60 = vector.extract %59[0, 0, 0, 0] : f32 from vector<1x1x1x1xf32>
    %61 = tpu.iota {dimensions = array<i32: 1>} : vector<1x128xi32>
    %c0_i32 = arith.constant 0 : i32
    %62 = vector.broadcast %c0_i32 : i32 to vector<1x128xi32>
    %63 = arith.cmpi eq, %61, %62 : vector<1x128xi32>
    %cst_22 = arith.constant 0.000000e+00 : f32
    %64 = vector.broadcast %21 : f32 to vector<1x128xf32>
    %65 = vector.broadcast %cst_22 : f32 to vector<1x128xf32>
    %66 = arith.select %63, %64, %65 : vector<1x128xi1>, vector<1x128xf32>
    %c1_i32 = arith.constant 1 : i32
    %67 = vector.broadcast %c1_i32 : i32 to vector<1x128xi32>
    %68 = arith.cmpi eq, %61, %67 : vector<1x128xi32>
    %69 = vector.broadcast %27 : f32 to vector<1x128xf32>
    %70 = arith.select %68, %69, %66 : vector<1x128xi1>, vector<1x128xf32>
    %c2_i32 = arith.constant 2 : i32
    %71 = vector.broadcast %c2_i32 : i32 to vector<1x128xi32>
    %72 = arith.cmpi eq, %61, %71 : vector<1x128xi32>
    %73 = vector.broadcast %51 : f32 to vector<1x128xf32>
    %74 = arith.select %72, %73, %70 : vector<1x128xi1>, vector<1x128xf32>
    %c3_i32 = arith.constant 3 : i32
    %75 = vector.broadcast %c3_i32 : i32 to vector<1x128xi32>
    %76 = arith.cmpi eq, %61, %75 : vector<1x128xi32>
    %77 = vector.broadcast %60 : f32 to vector<1x128xf32>
    %78 = arith.select %76, %77, %74 : vector<1x128xi1>, vector<1x128xf32>
    %c0_23 = arith.constant 0 : index
    %c0_24 = arith.constant 0 : index
    %79 = vector.load %arg4[%c0_23, %c0_24] : memref<1x128xf32, #tpu.memory_space<vmem>>, vector<1x128xf32>
    tpu.vector_store %arg4[%c0_23, %c0_24], %78 {strides = array<i32>} : memref<1x128xf32, #tpu.memory_space<vmem>>, vector<1x128xf32>,
    return
  }
}

</mosaic_0001>

<bundles_post_ra>
// kernel: tpu_custom_call.1
= control target key start
LH: loop header
LB: loop body
LE: loop exit
PB: predicated region body
PF: predicated region fallthrough
CT: control target
= control target key end

     0   :  { %10 = vsyncpa [#allocation3], 0  ;;  %s675_s0 = inlined_call_operand.hbm [shape: f32[16,16], index: 0, kind: input, shape index: {}]   ;;  %s676_s1 = inlined_call_operand.hbm [shape: f32[2,16,32], index: 1, kind: input, shape index: {}]   ;;  %s677_s2 = inlined_call_operand.hbm [shape: f32[2,16,16], index: 2, kind: input, shape index: {}]   ;;  %s678_s3 = inlined_call_operand.hbm [shape: f32[16,16], index: 3, kind: output, shape index: {0}]   ;;  %s679_s4 = inlined_call_operand.hbm [shape: f32[1,128], index: 4, kind: output, shape index: {1}]  }
   0x1   :  { %11 = vsyncpa [#allocation6], 0 }
   0x2   :  { %12 = vsyncpa [#allocation4], 0 }
   0x3   :  { %13 = vsyncpa [#allocation10], 0  ;;  %s31_s17 = sshll.u32 %s676_s1, 4  ;;  %s577_s18 = smov [#allocation5]   ;;  %s32_s17 = int_to_ptr.hbm [resolvable:$true] %s31_s17 }
   0x4   :  { %s33_s19 = sshll.u32 %s577_s18, 4  ;;  %s18_s22 = sshll.u32 %s675_s0, 4  ;;  %s34_s19 = int_to_ptr.vmem [resolvable:$true] %s33_s19  ;;  %s19_s22 = int_to_ptr.hbm [resolvable:$true] %s18_s22 }
   0x5   :  { %s578_s23 = smov 128   ;;  %s579_s24 = smov 8  }
   0x6   :  { %39 = dma.hbm_to_vmem [thread:$0]  %s32_s17, 512, %s34_s19, [#allocation6], %s578_s23, %s578_s23, %s579_s24  }
   0x7   :  { %s580_s25 = smov [#allocation2]   ;;  %s44_s1 = sshll.u32 %s677_s2, 4  ;;  %s45_s1 = int_to_ptr.hbm [resolvable:$true] %s44_s1 }
   0x8   :  { %s20_s26 = sshll.u32 %s580_s25, 4  ;;  %s581_s0 = smov [#allocation7]   ;;  %s21_s26 = int_to_ptr.vmem [resolvable:$true] %s20_s26 }
   0x9   :  { %26 = dma.hbm_to_vmem [thread:$0]  %s19_s22, 256, %s21_s26, [#allocation3], %s578_s23, %s578_s23, %s579_s24  }
   0xa   :  { %s46_s29 = sshll.u32 %s581_s0, 4  ;;  %s47_s29 = int_to_ptr.vmem [resolvable:$true] %s46_s29 }
   0xb   :  { %52 = dma.hbm_to_vmem [thread:$0]  %s45_s1, 512, %s47_s29, [#allocation6], %s578_s23, %s578_s23, %s579_s24  }
   0xc   :  { %569 = dma.done.wait [#allocation3], 256  }
   0xd   :  { %570 = vsyncadd [#allocation3], 4294967040 }
   0xe   :  { %571 = dma.done.wait [#allocation6], 1024  }
   0xf   :  { %572 = vsyncadd [#allocation6], 4294966272  ;;  %v66_v0 = vld [vmem:[#allocation2] sm:$0xff]  ;;  %v71_v2 = vld [vmem:[#allocation5 + $0x18] sm:$0xff]  ;;  %vm121_vm0 = vcmask 261120   ;;  %v292_v18 = vlaneseq  ;;  %vm108_vm1 = vcmask 130048  }
  0x10   :  { %v70_v1 = vld [vmem:[#allocation5 + $0x10] sm:$0xff]  ;;  %72 = vxpose.xlu0.b32.start [1/2] (short) (narrow) %v66_v0, 16  ;;  %v68_v4 = vld [vmem:[#allocation5] sm:$0xff]  ;;  %v69_v5 = vld [vmem:[#allocation5 + $0x8] sm:$0xff]  ;;  %v114_v6 = vpack.c.bf16 %v71_v2, %v71_v2  ;;  %v582_v30 = vmov 0.0   ;;  %vm313_vm4 = vcmask 7168  }
  0x11   :  { %v113_v3 = vpack.c.bf16 %v70_v1, %v70_v1  ;;  %v111_v7 = vpack.c.bf16 %v68_v4, %v68_v4  ;;  %v112_v8 = vpack.c.bf16 %v69_v5, %v69_v5  ;;  %v67_v13 = vld [vmem:[#allocation2 + $0x8] sm:$0xff]  ;;  %v293_v23 = vshrl.u32 %v292_v18, 7  ;;  %v345_v28 = vld [vmem:[#allocation7] sm:$0xff]  ;;  %v347_v34 = vld [vmem:[#allocation7 + $0x10] sm:$0xff]  ;;  %s583_s2 = smov [#allocation8]   ;;  %s392_s7 = sshll.u32 %s678_s3, 4  ;;  %s393_s7 = int_to_ptr.hbm [resolvable:$true] %s392_s7 }
  0x12   :  { %v142_v10 = vunpack.c.l.b16 %v114_v6  ;;  %v632_v24 = vand.u32 127, %v292_v18  ;;  %v346_v41 = vld [vmem:[#allocation7 + $0x8] sm:$0xff]  ;;  %v348_v42 = vld [vmem:[#allocation7 + $0x18] sm:$0xff]  ;;  %s390_s30 = sshll.u32 %s583_s2, 4  ;;  %s584_s18 = smov [#allocation9]   ;;  %s391_s30 = int_to_ptr.vmem [resolvable:$true] %s390_s30 }
  0x13   :  { %v141_v9 = vunpack.c.l.b16 %v113_v3  ;;  %v118_v11 = vunpack.c.l.b16 %v111_v7  ;;  %v119_v12 = vunpack.c.l.b16 %v112_v8  ;;  %v294_v26 = vadd.s32 8, %v293_v23  ;;  %s404_s19 = sshll.u32 %s584_s18, 4  ;;  %s405_s19 = int_to_ptr.vmem [resolvable:$true] %s404_s19 }
  0x14   :  { %vm297_vm2 = vcmp.eq.s32.totalorder %v293_v23, %v632_v24  ;;  %vm373_vm5 = vcmp.eq.s32.totalorder %v632_v24, 0  ;;  %vm376_vm6 = vcmp.eq.s32.totalorder %v632_v24, 1  ;;  %vm379_vm7 = vcmp.eq.s32.totalorder %v632_v24, 2 }
  0x15   :  { %v143_v14 = vpack.c.b16 %v142_v10, %v141_v9  ;;  %v120_v15 = vpack.c.b16 %v119_v12, %v118_v11  ;;  %vm298_vm3 = vcmp.eq.s32.totalorder %v294_v26, %v632_v24  ;;  %v426_v31 = vsel %vm297_vm2, 1.0, %v582_v30 }
  0x16   :  { %v427_v35 = vsel %vm298_vm3, 1.0, %v582_v30  ;;  %vm382_vm8 = vcmp.eq.s32.totalorder %v632_v24, 3 }
  0x17   :  { %v145_v16 = vsel %vm121_vm0, %v143_v14, 0  ;;  %v123_v17 = vsel %vm121_vm0, %v120_v15, 0 }
  0x18   :  { %73 = vxpose.xlu0.b32.end [2/2] (short) (narrow) %v67_v13, 16  ;;  %154 = vmatpush.bf16.xpose.msra.mxu1 %v145_v16 }
  0x19   :  { %132 = vmatpush.bf16.xpose.msra.mxu0 %v123_v17 }
  0x1f   :  { %423 = vmatmul.msk.bf16.vlgmr.msra.gmra.mxu1 %vm121_vm0, %v143_v14 }
  0x20   :  { %422 = vmatmul.msk.bf16.vlgmr.msra.gmra.mxu0 %vm121_vm0, %v120_v15 }
  0x9c   :  { %v628_v19 = vpop.f32.mrf.mxu1 }
  0x9d   :  { %v630_v22 = vpop.f32.mrf.mxu0 }
  0xa4   :  { %v638_v32 = vpop.f32.mrf.mxu1 }
  0xa5   :  { %v136_v38 = vpop.f32.mrf.mxu0  ;;  %v162_v43 = vpack.c.bf16 %v638_v32, %v628_v19 }
  0xa6   :  { %v161_v49 = vpack.c.bf16 %v136_v38, %v630_v22 }
  0xb4   :  { %v88_v20 = vpop.trf.xlu0 }
  0xb5   :  { %v104_v21 = vadd.f32 %v88_v20, %v66_v0 }
  0xb7   :  { %v106_v25 = vmul.f32 0.5, %v104_v21 }
  0xb9   :  { %v303_v27 = vsel %vm108_vm1, %v106_v25, 0.0  ;;  %109 = vst.msk [vmem:[#allocation8] sm:$0xff] %vm108_vm1, %v106_v25  ;;  %v349_v36 = vsub.f32 %v106_v25, %v345_v28  ;;  %v326_v39 = vmul.f32 %v426_v31, %v106_v25  ;;  %v277_v40 = vand.u32 2147483647, %v106_v25 }
  0xba   :  { %304 = vadd.xlane.f32.xlu1 %v303_v27  ;;  %v351_v44 = vsub.f32 %v106_v25, %v347_v34 }
  0xbb   :  { %v353_v52 = vmul.f32 %v349_v36, %v349_v36  ;;  %v328_v53 = vsel %vm108_vm1, %v326_v39, 0.0  ;;  %v279_v55 = vsel %vm108_vm1, %v277_v40, 0.0 }
  0xbc   :  { %v89_v29 = vpop.trf.xlu0  ;;  %v355_v60 = vmul.f32 %v351_v44, %v351_v44 }
  0xbd   :  { %v105_v33 = vadd.f32 %v89_v29, %v67_v13  ;;  %v357_v62 = vsel %vm108_vm1, %v353_v52, 0.0 }
  0xbe   :  { %v360_v1 = vsel %vm108_vm1, %v355_v60, 0.0 }
  0xbf   :  { %v107_v37 = vmul.f32 0.5, %v105_v33 }
  0xc1   :  { %110 = vst.msk [vmem:[#allocation8 + $0x8] sm:$0xff] %vm108_vm1, %v107_v37  ;;  %v306_v45 = vsel %vm108_vm1, %v107_v37, 0.0  ;;  %v115_v46 = vpack.c.bf16 %v107_v37, %v106_v25  ;;  %v327_v47 = vmul.f32 %v427_v35, %v107_v37  ;;  %v278_v48 = vand.u32 2147483647, %v107_v37 }
  0xc2   :  { %307 = vadd.xlane.f32.xlu1 %v306_v45  ;;  %v350_v50 = vsub.f32 %v107_v37, %v346_v41  ;;  %v352_v51 = vsub.f32 %v107_v37, %v348_v42  ;;  %398 = dma.vmem_to_hbm [thread:$0]  %s391_s30, 256, %s393_s7, [#allocation4], %s578_s23, %s578_s23, %s579_s24  }
  0xc3   :  { %176 = vmatpush.bf16.msra.mxu2 %v115_v46  ;;  %430 = vmatpush.bf16.msra.mxu3 %v115_v46  ;;  %v329_v54 = vsel %vm108_vm1, %v327_v47, 0.0  ;;  %v280_v56 = vsel %vm108_vm1, %v278_v48, 0.0  ;;  %s406_s23 = sshll.u32 %s679_s4, 4  ;;  %s407_s23 = int_to_ptr.hbm [resolvable:$true] %s406_s23 }
  0xc4   :  { %v330_v57 = vadd.f32 %v329_v54, %v328_v53  ;;  %v281_v58 = vadd.f32 %v280_v56, %v279_v55  ;;  %v354_v59 = vmul.f32 %v350_v50, %v350_v50  ;;  %v356_v61 = vmul.f32 %v352_v51, %v352_v51 }
  0xc6   :  { %424 = vmatmul.msk.bf16.vlgmr.msra.gmra.mxu2 %vm108_vm1, %v161_v49  ;;  %425 = vmatmul.msk.bf16.vlgmr.msra.gmra.mxu3 %vm108_vm1, %v162_v43  ;;  %v358_v63 = vsel %vm108_vm1, %v354_v59, 0.0  ;;  %v362_v3 = vsel %vm108_vm1, %v356_v61, 0.0 }
  0xc7   :  { %v359_v0 = vadd.f32 %v358_v63, %v357_v62 }
  0xc9   :  { %v361_v2 = vadd.f32 %v360_v1, %v359_v0 }
  0xcb   :  { %v363_v4 = vadd.f32 %v362_v3, %v361_v2 }
 0x12d   :  { %v305_v5 = vpop.xlane.xlu1 %304 }
 0x12e   :  { %v428_v6 = vadd.f32 -1.0, %v305_v5 }
 0x130   :  { %v311_v8 = vmul.f32 %v428_v6, %v428_v6 }
 0x132   :  { %v314_v11 = vsel %vm313_vm4, %v311_v8, 0.0 }
 0x135   :  { %v308_v7 = vpop.xlane.xlu1 %307 }
 0x136   :  { %v429_v9 = vadd.f32 -1.0, %v308_v7 }
 0x138   :  { %v312_v10 = vmul.f32 %v429_v9, %v429_v9 }
 0x13a   :  { %v315_v12 = vsel %vm313_vm4, %v312_v10, 0.0 }
 0x13b   :  { %v316_v13 = vadd.f32 %v315_v12, %v314_v11 }
 0x13d   :  { %317 = vadd.xlane.f32.xlu1 %v316_v13 }
 0x149   :  { %v178_v14 = vpop.f32.mrf.mxu2  ;;  %v183_v15 = vpop.f32.mrf.mxu3 }
 0x14a   :  { %v188_v16 = vsub.f32 %v630_v22, %v178_v14  ;;  %v190_v17 = vsub.f32 %v628_v19, %v183_v15 }
 0x14c   :  { %224 = vxpose.xlu0.b32.start [1/2] (short) (narrow) %v190_v17, 16  ;;  %192 = vxpose.xlu2.b32.start [1/2] (short) (narrow) %v188_v16, 16 }
 0x151   :  { %v180_v18 = vpop.f32.mrf.mxu2  ;;  %v185_v20 = vpop.f32.mrf.mxu3 }
 0x152   :  { %v189_v21 = vsub.f32 %v136_v38, %v180_v18  ;;  %v191_v23 = vsub.f32 %v638_v32, %v185_v20 }
 0x154   :  { %225 = vxpose.xlu0.b32.end [2/2] (short) (narrow) %v191_v23, 16  ;;  %193 = vxpose.xlu2.b32.end [2/2] (short) (narrow) %v189_v21, 16 }
 0x1b0   :  { %v318_v39 = vpop.xlane.xlu1 %317 }
 0x1b1   :  { %v319_v42 = vrot.slane %v318_v39, 4 }
 0x1b3   :  { %v320_v45 = vadd.f32 %v319_v42, %v318_v39 }
 0x1b5   :  { %v321_v49 = vrot.slane %v320_v45, 2 }
 0x1b7   :  { %v322_v55 = vadd.f32 %v321_v49, %v320_v45 }
 0x1b9   :  { %v323_v62 = vrot.slane %v322_v55, 1 }
 0x1c5   :  { %331 = vadd.xlane.f32.xlu0 %v330_v57  ;;  %282 = vadd.xlane.f32.xlu2 %v281_v58 }
 0x1e5   :  { %v208_v25 = vpop.trf.xlu2 }
 0x1e6   :  { %v256_v29 = vmul.f32 %v208_v25, %v188_v16 }
 0x1e8   :  { %v260_v19 = vsel %vm108_vm1, %v256_v29, 0.0 }
 0x1ed   :  { %v209_v26 = vpop.trf.xlu2 }
 0x1ee   :  { %v257_v27 = vmul.f32 %v209_v26, %v189_v21 }
 0x1f0   :  { %v240_v28 = vpop.trf.xlu0  ;;  %v261_v22 = vsel %vm108_vm1, %v257_v27, 0.0 }
 0x1f1   :  { %v258_v30 = vmul.f32 %v240_v28, %v190_v17  ;;  %v262_v31 = vadd.f32 %v261_v22, %v260_v19 }
 0x1f3   :  { %v263_v33 = vsel %vm108_vm1, %v258_v30, 0.0 }
 0x1f4   :  { %v264_v32 = vadd.f32 %v263_v33, %v262_v31 }
 0x1f8   :  { %v241_v34 = vpop.trf.xlu0 }
 0x1f9   :  { %v259_v35 = vmul.f32 %v241_v34, %v191_v23 }
 0x1fb   :  { %v265_v36 = vsel %vm108_vm1, %v259_v35, 0.0 }
 0x1fc   :  { %v266_v37 = vadd.f32 %v265_v36, %v264_v32 }
 0x1fe   :  { %267 = vadd.xlane.f32.xlu1 %v266_v37 }
 0x206   :  { %364 = vadd.xlane.f32.xlu1 %v363_v4  ;;  %v324_v4 = vadd.f32 %v323_v62, %v322_v55 }
 0x238   :  { %v283_v38 = vpop.xlane.xlu2 %282  ;;  %v332_v40 = vpop.xlane.xlu0 %331 }
 0x239   :  { %v284_v41 = vrot.slane %v283_v38, 4  ;;  %v333_v43 = vrot.slane %v332_v40, 4 }
 0x23b   :  { %v285_v44 = vadd.f32 %v284_v41, %v283_v38  ;;  %v334_v46 = vadd.f32 %v333_v43, %v332_v40 }
 0x23d   :  { %v286_v47 = vrot.slane %v285_v44, 2  ;;  %v335_v51 = vrot.slane %v334_v46, 2 }
 0x23f   :  { %v287_v53 = vadd.f32 %v286_v47, %v285_v44  ;;  %v336_v56 = vadd.f32 %v335_v51, %v334_v46 }
 0x241   :  { %v288_v59 = vrot.slane %v287_v53, 1  ;;  %v337_v63 = vrot.slane %v336_v56, 1 }
 0x243   :  { %v289_v2 = vadd.f32 %v288_v59, %v287_v53  ;;  %v338_v5 = vadd.f32 %v337_v63, %v336_v56 }
 0x271   :  { %v268_v48 = vpop.xlane.xlu1 %267 }
 0x272   :  { %v269_v50 = vrot.slane %v268_v48, 4 }
 0x274   :  { %v270_v52 = vadd.f32 %v269_v50, %v268_v48 }
 0x276   :  { %v271_v54 = vrot.slane %v270_v52, 2 }
 0x278   :  { %v272_v57 = vadd.f32 %v271_v54, %v270_v52 }
 0x279   :  { %v365_v58 = vpop.xlane.xlu1 %364 }
 0x27a   :  { %v366_v60 = vrot.slane %v365_v58, 4  ;;  %v273_v61 = vrot.slane %v272_v57, 1 }
 0x27c   :  { %v367_v0 = vadd.f32 %v366_v60, %v365_v58  ;;  %v274_v1 = vadd.f32 %v273_v61, %v272_v57 }
 0x27e   :  { %v368_v3 = vrot.slane %v367_v0, 2  ;;  %431 = vpush %v274_v1 }
 0x27f   :  { %433 = vpush %v289_v2 }
 0x280   :  { %v369_v6 = vadd.f32 %v368_v3, %v367_v0  ;;  %435 = vpush %v324_v4 }
 0x281   :  { %437 = vpush %v338_v5 }
 0x282   :  { %v370_v7 = vrot.slane %v369_v6, 1 }
 0x284   :  { %v371_v8 = vadd.f32 %v370_v7, %v369_v6 }
 0x286   :  { %439 = vpush %v371_v8 }
 0x2af   :  { %s432_s3 = spop %431 }
 0x2b0   :  { %s276_s8 = smul.f32 0.01, %s432_s3  ;;  %s434_s9 = spop %433 }
 0x2b1   :  { %s436_s10 = spop %435  ;;  %s291_s12 = smul.f32 0.1, %s434_s9 }
 0x2b2   :  { %s438_s11 = spop %437  ;;  %v374_v9 = vstv %s276_s8  ;;  %s340_s15 = smul.f32 0.1, %s436_s10 }
 0x2b3   :  { %s341_s13 = sand.u32 2147483647, %s438_s11  ;;  %v375_v10 = vsel %vm373_vm5, %v374_v9, 0.0  ;;  %v377_v11 = vstv %s291_s12 }
 0x2b4   :  { %s342_s14 = smul.f32 %s341_s13, %s341_s13  ;;  %v378_v13 = vsel %vm376_vm6, %v377_v11, %v375_v10 }
 0x2b6   :  { %s343_s16 = smul.f32 0.001, %s342_s14 }
 0x2b7   :  { %s440_s17 = spop %439 }
 0x2b8   :  { %s344_s20 = sadd.f32 %s343_s16, %s340_s15  ;;  %v383_v12 = vstv %s440_s17 }
 0x2ba   :  { %v380_v14 = vstv %s344_s20 }
 0x2bb   :  { %v381_v15 = vsel %vm379_vm7, %v380_v14, %v378_v13 }
 0x2bc   :  { %v384_v16 = vsel %vm382_vm8, %v383_v12, %v381_v15 }
 0x2bd   :  { %385 = vst [vmem:[#allocation9] sm:$0x1] %v384_v16 }
 0x2be   :  { %409 = dma.vmem_to_hbm [thread:$0]  %s405_s19, 16, %s407_s23, [#allocation10]  }
 0x2bf   :  { %573 = dma.done.wait [#allocation4], 256  }
 0x2c0   :  { %574 = vsyncadd [#allocation4], 4294967040 }
 0x2c1   :  { %575 = dma.done.wait [#allocation10], 16  }
 0x2c2   :  { %576 = vsyncadd [#allocation10], 4294967280 }
 0x2c3   :  { %418 = vsyncpa [#allocation3], 1 }
 0x2c4   :  { %419 = vsyncpa [#allocation6], 1 }
 0x2c5   :  { %420 = vsyncpa [#allocation4], 1 }
 0x2c6   :  { %421 = vsyncpa [#allocation10], 1 }

</bundles_post_ra>
